<compile_context>
chip_gen: v7x
topology: tpu7x:2x2x1
jax: 0.10.0
libtpu: 0.0.40
codegen_flags: <defaults>
</compile_context>

<pallas_src>
import jax
import jax.numpy as jnp
from jax.experimental import pallas as pl
from jax.experimental.pallas import tpu as pltpu


def decoder_decode_kernel(onehot_ref, h0_ref, c0_ref,
                          gx_ref, whh_ref, wout_ref, bout_ref,
                          logp_ref, hout_ref, cout_ref,
                          h_sc, c_sc):
    t = pl.program_id(0)
    B, H = h0_ref.shape

    # Initialize the VMEM-resident recurrent state on the first step.
    @pl.when(t == 0)
    def _():
        h_sc[...] = h0_ref[...]
        c_sc[...] = c0_ref[...]

    h = h_sc[...]                                 # (B, H) f32
    c = c_sc[...]                                 # (B, H) f32

    # gates = gather(ReLU(emb) @ W_ih^T + b, ids) + h @ W_hh^T
    # The gather is a one-hot matmul on the MXU; gx_table already folds the
    # embedding, ReLU, input projection and both biases.
    onehot = onehot_ref[0]                        # (B, VPAD) f32
    gates = (jnp.dot(onehot, gx_ref[...], preferred_element_type=jnp.float32)
             + jnp.dot(h, whh_ref[...], preferred_element_type=jnp.float32))

    # PyTorch LSTM gate order along 4H: [i, f, g, o]; one sigmoid over [i, f].
    i_f = jax.nn.sigmoid(gates[:, :2 * H])
    i = i_f[:, :H]
    f = i_f[:, H:]
    g = jnp.tanh(gates[:, 2 * H:3 * H])
    o = jax.nn.sigmoid(gates[:, 3 * H:])

    c_new = f * c + i * g
    h_new = o * jnp.tanh(c_new)

    # Output projection (nn.Linear) + LogSoftmax(dim=1).
    logits = (jnp.dot(h_new, wout_ref[...], preferred_element_type=jnp.float32)
              + bout_ref[...])
    m = jnp.max(logits, axis=1, keepdims=True)
    lse = m + jnp.log(jnp.sum(jnp.exp(logits - m), axis=1, keepdims=True))

    logp_ref[...] = (logits - lse)[None, :, :]

    # Carry state; expose final state on the last step only.
    h_sc[...] = h_new
    c_sc[...] = c_new

    @pl.when(t == pl.num_programs(0) - 1)
    def _():
        hout_ref[...] = h_new
        cout_ref[...] = c_new


@jax.jit
def decoder_rnn_decode(token_ids, h0, c0, params):
    """Run T teacher-forced decode steps in one pallas_call.

    token_ids : (T, B) int32
    h0, c0    : (B, H) f32
    returns   : log_probs (T, B, O) f32, hT (B, H), cT (B, H)
    """
    T, B = token_ids.shape
    H = h0.shape[1]
    VPAD, G4 = params["gx_table"].shape
    O = params["w_out_t"].shape[1]

    # One-hot encode once for the whole sequence (tiny: T*B*VPAD f32).
    # Out-of-range ids map to an all-zero row (no OOB reads in the kernel).
    onehot = (token_ids[:, :, None]
              == jnp.arange(VPAD, dtype=jnp.int32)[None, None, :]
              ).astype(jnp.float32)

    const = lambda t: (0, 0)

    logp, h1, c1 = pl.pallas_call(
        decoder_decode_kernel,
        out_shape=(
            jax.ShapeDtypeStruct((T, B, O), jnp.float32),
            jax.ShapeDtypeStruct((B, H), jnp.float32),
            jax.ShapeDtypeStruct((B, H), jnp.float32),
        ),
        grid=(T,),
        in_specs=[
            pl.BlockSpec((1, B, VPAD), lambda t: (t, 0, 0)),   # per-step one-hot
            pl.BlockSpec((B, H), const),                       # h0 (read once)
            pl.BlockSpec((B, H), const),                       # c0 (read once)
            pl.BlockSpec((VPAD, G4), const),                   # gx_table, VMEM-resident
            pl.BlockSpec((H, G4), const),                      # W_hh^T,   VMEM-resident
            pl.BlockSpec((H, O), const),                       # W_out^T,  VMEM-resident
            pl.BlockSpec((1, O), const),                       # b_out
        ],
        out_specs=(
            pl.BlockSpec((1, B, O), lambda t: (t, 0, 0)),      # per-step log-probs
            pl.BlockSpec((B, H), const),                       # final h
            pl.BlockSpec((B, H), const),                       # final c
        ),
        scratch_shapes=[
            pltpu.VMEM((B, H), jnp.float32),                   # h carry
            pltpu.VMEM((B, H), jnp.float32),                   # c carry
        ],
        compiler_params=pltpu.CompilerParams(
            dimension_semantics=("arbitrary",)),
    )(onehot, h0, c0, params["gx_table"], params["w_hh_t"],
      params["w_out_t"], params["b_out"])

    return logp, h1, c1


def decoder_rnn_forward(input_ids, hidden, encoder_outputs, params):
    """Matches DecoderRNN.forward exactly (single step, LSTM, num_layers=1).

    input_ids : (B,) int32
    hidden    : (h0, c0), each (1, B, H) f32
    returns   : (log_probs (B, O), (h1, c1) each (1, B, H), None)
    """
    del encoder_outputs  # unused by the original module's math (no attention)
    h0, c0 = hidden
    logp, h1, c1 = decoder_rnn_decode(
        input_ids[None, :].astype(jnp.int32), h0[0], c0[0], params)
    return logp[0], (h1[None, :, :], c1[None, :, :]), None


def make_params(key, vocab_size, hidden_size, output_size, vpad=128):
    """Raw PyTorch-style weights + kernel-ready (precomputed) parameters."""
    assert vpad >= vocab_size and vpad % 128 == 0
    H, V, O = hidden_size, vocab_size, output_size
    ks = jax.random.split(key, 7)
    s = 1.0 / jnp.sqrt(H)
    emb = jax.random.normal(ks[0], (V, H), jnp.float32)
    w_ih = jax.random.uniform(ks[1], (4 * H, H), jnp.float32, -s, s)
    w_hh = jax.random.uniform(ks[2], (4 * H, H), jnp.float32, -s, s)
    b_ih = jax.random.uniform(ks[3], (4 * H,), jnp.float32, -s, s)
    b_hh = jax.random.uniform(ks[4], (4 * H,), jnp.float32, -s, s)
    w_out = jax.random.uniform(ks[5], (O, H), jnp.float32, -s, s)
    b_out = jax.random.uniform(ks[6], (O,), jnp.float32, -s, s)
    raw = dict(emb=emb, w_ih=w_ih, w_hh=w_hh, b_ih=b_ih, b_hh=b_hh,
               w_out=w_out, b_out=b_out)

    # gx_table[v] = ReLU(emb[v]) @ W_ih^T + (b_ih + b_hh); gather commutes with
    # the matmul over V, and ReLU(emb)[id] == ReLU(emb[id]).
    gx = jnp.maximum(emb, 0.0) @ w_ih.T + (b_ih + b_hh)[None, :]        # (V, 4H)
    gx_pad = jnp.zeros((vpad, 4 * H), jnp.float32).at[:V].set(gx)       # (Vpad, 4H)

    kernel_params = dict(
        gx_table=gx_pad,                 # (Vpad, 4H) f32
        w_hh_t=w_hh.T,                   # (H, 4H)    f32 (keep f32: fed-back state)
        w_out_t=w_out.T,                 # (H, O)     f32
        b_out=b_out[None, :],            # (1, O)     f32
    )
    return raw, kernel_params


def reference_decode(token_ids, h0, c0, raw):
    """Pure-JAX f32 reference mirroring the PyTorch forward, unrolled over T."""
    H = h0.shape[1]

    def step(carry, ids):
        h, c = carry
        x = jnp.maximum(raw["emb"][ids], 0.0)
        gates = (x @ raw["w_ih"].T + raw["b_ih"][None, :]
                 + h @ raw["w_hh"].T + raw["b_hh"][None, :])
        i = jax.nn.sigmoid(gates[:, :H])
        f = jax.nn.sigmoid(gates[:, H:2 * H])
        g = jnp.tanh(gates[:, 2 * H:3 * H])
        o = jax.nn.sigmoid(gates[:, 3 * H:])
        c1 = f * c + i * g
        h1 = o * jnp.tanh(c1)
        logits = h1 @ raw["w_out"].T + raw["b_out"][None, :]
        return (h1, c1), jax.nn.log_softmax(logits, axis=1)

    (h, c), logps = jax.lax.scan(step, (h0, c0), token_ids)
    return logps, h, c


if __name__ == "__main__":
    # Small, lane/sublane-aligned shapes: B=8 (sublanes), H=128, O=256 (lanes).
    B, H, V, O, T = 8, 128, 50, 256, 12

    key = jax.random.PRNGKey(0)
    k_param, k_ids, k_h, k_c = jax.random.split(key, 4)

    raw, params = make_params(k_param, V, H, O)
    ids = jax.random.randint(k_ids, (T, B), 0, V, jnp.int32)
    h0 = jax.random.normal(k_h, (B, H), jnp.float32)
    c0 = jax.random.normal(k_c, (B, H), jnp.float32)

    # --- Single step: exact DecoderRNN.forward semantics --------------------
    out, (h1, c1), attn = decoder_rnn_forward(
        ids[0], (h0[None, :, :], c0[None, :, :]), None, params)
    jax.block_until_ready((out, h1, c1))
    ref_lp1, ref_h1, ref_c1 = reference_decode(ids[:1], h0, c0, raw)
    assert attn is None
    assert jnp.allclose(out, ref_lp1[0], atol=2e-2, rtol=2e-2)
    assert jnp.allclose(h1[0], ref_h1, atol=2e-2, rtol=2e-2)
    assert jnp.allclose(c1[0], ref_c1, atol=2e-2, rtol=2e-2)

    # --- Multi-step teacher-forced decode: T steps in one pallas_call -------
    logp, hT, cT = decoder_rnn_decode(ids, h0, c0, params)
    jax.block_until_ready((logp, hT, cT))
    ref_lp, ref_hT, ref_cT = reference_decode(ids, h0, c0, raw)
    assert jnp.allclose(logp, ref_lp, atol=3e-2, rtol=3e-2)
    assert jnp.allclose(hT, ref_hT, atol=3e-2, rtol=3e-2)
    assert jnp.allclose(cT, ref_cT, atol=3e-2, rtol=3e-2)

    print("KERNEL_OK")
</pallas_src>

<mosaic_0001>
module attributes {stable_mosaic.version = 11 : i64} {
  func.func @decoder_decode_kernel(%arg0: i32, %arg1: memref<1x8x128xf32, #tpu.memory_space<vmem>>, %arg2: memref<8x128xf32, #tpu.memory_space<vmem>>, %arg3: memref<8x128xf32, #tpu.memory_space<vmem>>, %arg4: memref<128x512xf32, #tpu.memory_space<vmem>>, %arg5: memref<128x512xf32, #tpu.memory_space<vmem>>, %arg6: memref<128x256xf32, #tpu.memory_space<vmem>>, %arg7: memref<1x256xf32, #tpu.memory_space<vmem>>, %arg8: memref<1x8x256xf32, #tpu.memory_space<vmem>>, %arg9: memref<8x128xf32, #tpu.memory_space<vmem>>, %arg10: memref<8x128xf32, #tpu.memory_space<vmem>>, %arg11: memref<8x128xf32, #tpu.memory_space<vmem>>, %arg12: memref<8x128xf32, #tpu.memory_space<vmem>>) attributes {dimension_semantics = [#tpu.dimension_semantics<arbitrary>], iteration_bounds = array<i64: 1>, scalar_prefetch = 0 : i64, scratch_operands = 2 : i64, tpu.core_type = #tpu.core_type<tc>, window_params = [{transform_indices = @transform_0, window_bounds = array<i64: 1, 8, 128>}, {pipeline_mode = #tpu.pipeline_mode<synchronous>, transform_indices = @transform_1, window_bounds = array<i64: 8, 128>}, {pipeline_mode = #tpu.pipeline_mode<synchronous>, transform_indices = @transform_2, window_bounds = array<i64: 8, 128>}, {pipeline_mode = #tpu.pipeline_mode<synchronous>, transform_indices = @transform_3, window_bounds = array<i64: 128, 512>}, {pipeline_mode = #tpu.pipeline_mode<synchronous>, transform_indices = @transform_4, window_bounds = array<i64: 128, 512>}, {pipeline_mode = #tpu.pipeline_mode<synchronous>, transform_indices = @transform_5, window_bounds = array<i64: 128, 256>}, {pipeline_mode = #tpu.pipeline_mode<synchronous>, transform_indices = @transform_6, window_bounds = array<i64: 1, 256>}, {transform_indices = @transform_7, window_bounds = array<i64: 1, 8, 256>}, {pipeline_mode = #tpu.pipeline_mode<synchronous>, transform_indices = @transform_8, window_bounds = array<i64: 8, 128>}, {pipeline_mode = #tpu.pipeline_mode<synchronous>, transform_indices = @transform_9, window_bounds = array<i64: 8, 128>}]} {
    %c0_i32 = arith.constant 0 : i32
    %0 = arith.cmpi eq, %arg0, %c0_i32 : i32
    %1 = arith.extui %0 : i1 to i32
    %c0_i32_0 = arith.constant 0 : i32
    %2 = arith.cmpi ne, %1, %c0_i32_0 : i32
    scf.if %2 {
      %c0_30 = arith.constant 0 : index
      %c0_31 = arith.constant 0 : index
      %56 = vector.load %arg2[%c0_30, %c0_31] : memref<8x128xf32, #tpu.memory_space<vmem>>, vector<8x128xf32>
      %c0_32 = arith.constant 0 : index
      %c0_33 = arith.constant 0 : index
      %57 = vector.load %arg11[%c0_32, %c0_33] : memref<8x128xf32, #tpu.memory_space<vmem>>, vector<8x128xf32>
      tpu.vector_store %arg11[%c0_32, %c0_33], %56 {strides = array<i32>} : memref<8x128xf32, #tpu.memory_space<vmem>>, vector<8x128xf32>,
      %c0_34 = arith.constant 0 : index
      %c0_35 = arith.constant 0 : index
      %58 = vector.load %arg3[%c0_34, %c0_35] : memref<8x128xf32, #tpu.memory_space<vmem>>, vector<8x128xf32>
      %c0_36 = arith.constant 0 : index
      %c0_37 = arith.constant 0 : index
      %59 = vector.load %arg12[%c0_36, %c0_37] : memref<8x128xf32, #tpu.memory_space<vmem>>, vector<8x128xf32>
      tpu.vector_store %arg12[%c0_36, %c0_37], %58 {strides = array<i32>} : memref<8x128xf32, #tpu.memory_space<vmem>>, vector<8x128xf32>,
    } else {
    }
    %c0 = arith.constant 0 : index
    %c0_1 = arith.constant 0 : index
    %3 = vector.load %arg11[%c0, %c0_1] : memref<8x128xf32, #tpu.memory_space<vmem>>, vector<8x128xf32>
    %c0_2 = arith.constant 0 : index
    %c0_3 = arith.constant 0 : index
    %4 = vector.load %arg12[%c0_2, %c0_3] : memref<8x128xf32, #tpu.memory_space<vmem>>, vector<8x128xf32>
    %c0_4 = arith.constant 0 : index
    %c0_5 = arith.constant 0 : index
    %c0_6 = arith.constant 0 : index
    %5 = vector.load %arg1[%c0_4, %c0_5, %c0_6] : memref<1x8x128xf32, #tpu.memory_space<vmem>>, vector<1x8x128xf32>
    %6 = vector.shape_cast %5 : vector<1x8x128xf32> to vector<8x128xf32>
    %c0_7 = arith.constant 0 : index
    %c0_8 = arith.constant 0 : index
    %7 = vector.load %arg4[%c0_7, %c0_8] : memref<128x512xf32, #tpu.memory_space<vmem>>, vector<128x512xf32>
    %cst = arith.constant dense<0.000000e+00> : vector<8x512xf32>
    %8 = tpu.matmul %6, %7, %cst {dimension_numbers = #tpu.dot_dimension_numbers<[1], [0], [0], [1], [0, 0, 1, 1], [], []>} : vector<8x128xf32>, vector<128x512xf32>, vector<8x512xf32> -> vector<8x512xf32>
    %c0_9 = arith.constant 0 : index
    %c0_10 = arith.constant 0 : index
    %9 = vector.load %arg5[%c0_9, %c0_10] : memref<128x512xf32, #tpu.memory_space<vmem>>, vector<128x512xf32>
    %cst_11 = arith.constant dense<0.000000e+00> : vector<8x512xf32>
    %10 = tpu.matmul %3, %9, %cst_11 {dimension_numbers = #tpu.dot_dimension_numbers<[1], [0], [0], [1], [0, 0, 1, 1], [], []>} : vector<8x128xf32>, vector<128x512xf32>, vector<8x512xf32> -> vector<8x512xf32>
    %11 = arith.addf %8, %10 : vector<8x512xf32>
    %12 = vector.extract_strided_slice %11 {offsets = [0, 0], sizes = [8, 256], strides = [1, 1]} : vector<8x512xf32> to vector<8x256xf32>
    %13 = arith.negf %12 : vector<8x256xf32>
    %14 = math.exp %13 : vector<8x256xf32>
    %cst_12 = arith.constant 1.000000e+00 : f32
    %15 = vector.broadcast %cst_12 : f32 to vector<8x256xf32>
    %16 = arith.addf %15, %14 : vector<8x256xf32>
    %17 = arith.divf %15, %16 : vector<8x256xf32>
    %18 = vector.extract_strided_slice %17 {offsets = [0, 0], sizes = [8, 128], strides = [1, 1]} : vector<8x256xf32> to vector<8x128xf32>
    %19 = vector.extract_strided_slice %17 {offsets = [0, 128], sizes = [8, 128], strides = [1, 1]} : vector<8x256xf32> to vector<8x128xf32>
    %20 = vector.extract_strided_slice %11 {offsets = [0, 256], sizes = [8, 128], strides = [1, 1]} : vector<8x512xf32> to vector<8x128xf32>
    %21 = math.tanh %20 : vector<8x128xf32>
    %22 = vector.extract_strided_slice %11 {offsets = [0, 384], sizes = [8, 128], strides = [1, 1]} : vector<8x512xf32> to vector<8x128xf32>
    %23 = arith.negf %22 : vector<8x128xf32>
    %24 = math.exp %23 : vector<8x128xf32>
    %cst_13 = arith.constant 1.000000e+00 : f32
    %25 = vector.broadcast %cst_13 : f32 to vector<8x128xf32>
    %26 = arith.addf %25, %24 : vector<8x128xf32>
    %27 = arith.divf %25, %26 : vector<8x128xf32>
    %28 = arith.mulf %19, %4 : vector<8x128xf32>
    %29 = arith.mulf %18, %21 : vector<8x128xf32>
    %30 = arith.addf %28, %29 : vector<8x128xf32>
    %31 = math.tanh %30 : vector<8x128xf32>
    %32 = arith.mulf %27, %31 : vector<8x128xf32>
    %c0_14 = arith.constant 0 : index
    %c0_15 = arith.constant 0 : index
    %33 = vector.load %arg6[%c0_14, %c0_15] : memref<128x256xf32, #tpu.memory_space<vmem>>, vector<128x256xf32>
    %cst_16 = arith.constant dense<0.000000e+00> : vector<8x256xf32>
    %34 = tpu.matmul %32, %33, %cst_16 {dimension_numbers = #tpu.dot_dimension_numbers<[1], [0], [0], [1], [0, 0, 1, 1], [], []>} : vector<8x128xf32>, vector<128x256xf32>, vector<8x256xf32> -> vector<8x256xf32>
    %c0_17 = arith.constant 0 : index
    %c0_18 = arith.constant 0 : index
    %35 = vector.load %arg7[%c0_17, %c0_18] : memref<1x256xf32, #tpu.memory_space<vmem>>, vector<1x256xf32>
    %36 = vector.broadcast %35 : vector<1x256xf32> to vector<8x256xf32>
    %37 = arith.addf %34, %36 : vector<8x256xf32>
    %cst_19 = arith.constant dense<0xFF800000> : vector<8xf32>
    %38 = vector.multi_reduction <maximumf>, %37, %cst_19 [1] : vector<8x256xf32> to vector<8xf32>
    %39 = vector.shape_cast %38 : vector<8xf32> to vector<8x1xf32>
    %40 = vector.broadcast %39 : vector<8x1xf32> to vector<8x256xf32>
    %41 = arith.subf %37, %40 : vector<8x256xf32>
    %42 = math.exp %41 : vector<8x256xf32>
    %cst_20 = arith.constant dense<0.000000e+00> : vector<8xf32>
    %43 = vector.multi_reduction <add>, %42, %cst_20 [1] : vector<8x256xf32> to vector<8xf32>
    %44 = vector.shape_cast %43 : vector<8xf32> to vector<8x1xf32>
    %45 = math.log %44 : vector<8x1xf32>
    %46 = arith.addf %39, %45 : vector<8x1xf32>
    %47 = vector.broadcast %46 : vector<8x1xf32> to vector<8x256xf32>
    %48 = arith.subf %37, %47 : vector<8x256xf32>
    %49 = vector.shape_cast %48 : vector<8x256xf32> to vector<1x8x256xf32>
    %c0_21 = arith.constant 0 : index
    %c0_22 = arith.constant 0 : index
    %c0_23 = arith.constant 0 : index
    %50 = vector.load %arg8[%c0_21, %c0_22, %c0_23] : memref<1x8x256xf32, #tpu.memory_space<vmem>>, vector<1x8x256xf32>
    tpu.vector_store %arg8[%c0_21, %c0_22, %c0_23], %49 {strides = array<i32>} : memref<1x8x256xf32, #tpu.memory_space<vmem>>, vector<1x8x256xf32>,
    %c0_24 = arith.constant 0 : index
    %c0_25 = arith.constant 0 : index
    %51 = vector.load %arg11[%c0_24, %c0_25] : memref<8x128xf32, #tpu.memory_space<vmem>>, vector<8x128xf32>
    tpu.vector_store %arg11[%c0_24, %c0_25], %32 {strides = array<i32>} : memref<8x128xf32, #tpu.memory_space<vmem>>, vector<8x128xf32>,
    %c0_26 = arith.constant 0 : index
    %c0_27 = arith.constant 0 : index
    %52 = vector.load %arg12[%c0_26, %c0_27] : memref<8x128xf32, #tpu.memory_space<vmem>>, vector<8x128xf32>
    tpu.vector_store %arg12[%c0_26, %c0_27], %30 {strides = array<i32>} : memref<8x128xf32, #tpu.memory_space<vmem>>, vector<8x128xf32>,
    %c0_i32_28 = arith.constant 0 : i32
    %53 = arith.cmpi eq, %arg0, %c0_i32_28 : i32
    %54 = arith.extui %53 : i1 to i32
    %c0_i32_29 = arith.constant 0 : i32
    %55 = arith.cmpi ne, %54, %c0_i32_29 : i32
    scf.if %55 {
      %c0_30 = arith.constant 0 : index
      %c0_31 = arith.constant 0 : index
      %56 = vector.load %arg9[%c0_30, %c0_31] : memref<8x128xf32, #tpu.memory_space<vmem>>, vector<8x128xf32>
      tpu.vector_store %arg9[%c0_30, %c0_31], %32 {strides = array<i32>} : memref<8x128xf32, #tpu.memory_space<vmem>>, vector<8x128xf32>,
      %c0_32 = arith.constant 0 : index
      %c0_33 = arith.constant 0 : index
      %57 = vector.load %arg10[%c0_32, %c0_33] : memref<8x128xf32, #tpu.memory_space<vmem>>, vector<8x128xf32>
      tpu.vector_store %arg10[%c0_32, %c0_33], %30 {strides = array<i32>} : memref<8x128xf32, #tpu.memory_space<vmem>>, vector<8x128xf32>,
    } else {
    }
    return
  }
  func.func @transform_0(%arg0: i32) -> (i32, i32, i32) {
    %c0_i32 = arith.constant 0 : i32
    %c0_i32_0 = arith.constant 0 : i32
    %c0_i32_1 = arith.constant 0 : i32
    return %arg0, %c0_i32, %c0_i32_0 : i32, i32, i32
  }
  func.func @transform_1(%arg0: i32) -> (i32, i32) {
    %c0_i32 = arith.constant 0 : i32
    %c0_i32_0 = arith.constant 0 : i32
    %c0_i32_1 = arith.constant 0 : i32
    return %c0_i32, %c0_i32_0 : i32, i32
  }
  func.func @transform_2(%arg0: i32) -> (i32, i32) {
    %c0_i32 = arith.constant 0 : i32
    %c0_i32_0 = arith.constant 0 : i32
    %c0_i32_1 = arith.constant 0 : i32
    return %c0_i32, %c0_i32_0 : i32, i32
  }
  func.func @transform_3(%arg0: i32) -> (i32, i32) {
    %c0_i32 = arith.constant 0 : i32
    %c0_i32_0 = arith.constant 0 : i32
    %c0_i32_1 = arith.constant 0 : i32
    return %c0_i32, %c0_i32_0 : i32, i32
  }
  func.func @transform_4(%arg0: i32) -> (i32, i32) {
    %c0_i32 = arith.constant 0 : i32
    %c0_i32_0 = arith.constant 0 : i32
    %c0_i32_1 = arith.constant 0 : i32
    return %c0_i32, %c0_i32_0 : i32, i32
  }
  func.func @transform_5(%arg0: i32) -> (i32, i32) {
    %c0_i32 = arith.constant 0 : i32
    %c0_i32_0 = arith.constant 0 : i32
    %c0_i32_1 = arith.constant 0 : i32
    return %c0_i32, %c0_i32_0 : i32, i32
  }
  func.func @transform_6(%arg0: i32) -> (i32, i32) {
    %c0_i32 = arith.constant 0 : i32
    %c0_i32_0 = arith.constant 0 : i32
    %c0_i32_1 = arith.constant 0 : i32
    return %c0_i32, %c0_i32_0 : i32, i32
  }
  func.func @transform_7(%arg0: i32) -> (i32, i32, i32) {
    %c0_i32 = arith.constant 0 : i32
    %c0_i32_0 = arith.constant 0 : i32
    %c0_i32_1 = arith.constant 0 : i32
    return %arg0, %c0_i32, %c0_i32_0 : i32, i32, i32
  }
  func.func @transform_8(%arg0: i32) -> (i32, i32) {
    %c0_i32 = arith.constant 0 : i32
    %c0_i32_0 = arith.constant 0 : i32
    %c0_i32_1 = arith.constant 0 : i32
    return %c0_i32, %c0_i32_0 : i32, i32
  }
  func.func @transform_9(%arg0: i32) -> (i32, i32) {
    %c0_i32 = arith.constant 0 : i32
    %c0_i32_0 = arith.constant 0 : i32
    %c0_i32_1 = arith.constant 0 : i32
    return %c0_i32, %c0_i32_0 : i32, i32
  }
}

</mosaic_0001>

<bundles_post_ra>
// kernel: decoder_rnn_decode.1
= control target key start
LH: loop header
LB: loop body
LE: loop exit
PB: predicated region body
PF: predicated region fallthrough
CT: control target
= control target key end

     0   :  { %15 = vsyncpa [#allocation5], 0  ;;  %s1200_s0 = inlined_call_operand.vmem [shape: f32[1,8,128], index: 0, kind: input, shape index: {}]   ;;  %s1201_s1 = inlined_call_operand.vmem [shape: f32[8,128], index: 1, kind: input, shape index: {}]   ;;  %s1202_s2 = inlined_call_operand.vmem [shape: f32[8,128], index: 2, kind: input, shape index: {}]   ;;  %s1203_s3 = inlined_call_operand.hbm [shape: f32[128,512], index: 3, kind: input, shape index: {}]   ;;  %s1204_s4 = inlined_call_operand.hbm [shape: f32[128,512], index: 4, kind: input, shape index: {}]   ;;  %s1205_s5 = inlined_call_operand.hbm [shape: f32[128,256], index: 5, kind: input, shape index: {}]   ;;  %s1206_s6 = inlined_call_operand.vmem [shape: f32[1,256], index: 6, kind: input, shape index: {}]   ;;  %s1207_s7 = inlined_call_operand.hbm [shape: f32[1,8,256], index: 7, kind: output, shape index: {0}]   ;;  %s1208_s8 = inlined_call_operand.hbm [shape: f32[8,128], index: 8, kind: output, shape index: {1}]   ;;  %s1209_s9 = inlined_call_operand.hbm [shape: f32[8,128], index: 9, kind: output, shape index: {2}]  }
   0x1   :  { %16 = vsyncpa [#allocation8], 0 }
   0x2   :  { %17 = vsyncpa [#allocation6], 0 }
   0x3   :  { %18 = vsyncpa [#allocation12], 0  ;;  %s1043_s30 = smov [#allocation7]   ;;  %s1044_s11 = smov [#allocation4]  }
   0x4   :  { %s42_s10 = sshll.u32 %s1043_s30, 4  ;;  %s30_s12 = sshll.u32 %s1044_s11, 4  ;;  %s43_s10 = int_to_ptr.vmem [resolvable:$true] %s42_s10  ;;  %s1104_s12 = int_to_ptr.vmem [resolvable:$true] %s30_s12 }
   0x5   :  { %s903_s15 = scalar_lea.hbm %s1204_s4, 8192 }
   0x6   :  { %p904_p0 = scmp.ne.s32.totalorder %s1204_s4, %s903_s15  ;;  %p907_p1 = scmp.lt.u32.totalorder %s903_s15, %s1204_s4 }
   0x8   :  { %p909_p2 = pnand %p907_p1, %p904_p0 }
   0xa   :  { %912 = shalt.err (!%p909_p2)
}
   0xb   :  { %s913_s20 = scalar_lea.vmem %s43_s10, 8192  ;;  %p918_p4 = scmp.lt.s32.totalorder %s43_s10, %s43_s10 }
   0xc   :  { %p914_p3 = scmp.ne.s32.totalorder %s43_s10, %s913_s20  ;;  %p919_p5 = scmp.lt.s32.totalorder %s913_s20, %s913_s20 }
   0xe   :  { %p920_p6 = por %p919_p5, %p918_p4 }
  0x10   :  { %p921_p7 = pnand %p920_p6, %p914_p3 }
  0x12   :  { %924 = shalt.err (!%p921_p7)
}
  0x13   :  { %s1045_s21 = smov 512   ;;  %s1046_s22 = smov 32  }
  0x14   :  { %48 = dma.hbm_to_vmem [thread:$0]  %s1204_s4, 8192, %s43_s10, [#allocation8], %s1045_s21, %s1045_s21, %s1046_s22  }
  0x15   :  { %s925_s27 = scalar_lea.hbm %s1203_s3, 8192 }
  0x16   :  { %p926_p8 = scmp.ne.s32.totalorder %s1203_s3, %s925_s27  ;;  %p929_p9 = scmp.lt.u32.totalorder %s925_s27, %s1203_s3 }
  0x18   :  { %p931_p10 = pnand %p929_p9, %p926_p8 }
  0x1a   :  { %934 = shalt.err (!%p931_p10)
}
  0x1b   :  { %s935_s13 = scalar_lea.vmem %s1104_s12, 8192  ;;  %p940_p12 = scmp.lt.s32.totalorder %s1104_s12, %s1104_s12 }
  0x1c   :  { %p936_p11 = scmp.ne.s32.totalorder %s1104_s12, %s935_s13  ;;  %p941_p13 = scmp.lt.s32.totalorder %s935_s13, %s935_s13 }
  0x1e   :  { %p942_p0 = por %p941_p13, %p940_p12 }
  0x20   :  { %p943_p1 = pnand %p942_p0, %p936_p11 }
  0x22   :  { %946 = shalt.err (!%p943_p1)
}
  0x23   :  { %36 = dma.hbm_to_vmem [thread:$0]  %s1203_s3, 8192, %s1104_s12, [#allocation5], %s1045_s21, %s1045_s21, %s1046_s22  }
  0x24   :  { %s1047_s14 = smov [#allocation9]   ;;  %s947_s18 = scalar_lea.hbm %s1205_s5, 4096 }
  0x25   :  { %s54_s15 = sshll.u32 %s1047_s14, 4  ;;  %p948_p2 = scmp.ne.s32.totalorder %s1205_s5, %s947_s18  ;;  %s55_s15 = int_to_ptr.vmem [resolvable:$true] %s54_s15 }
  0x26   :  { %p951_p3 = scmp.lt.u32.totalorder %s947_s18, %s1205_s5 }
  0x28   :  { %p953_p4 = pnand %p951_p3, %p948_p2 }
  0x2a   :  { %956 = shalt.err (!%p953_p4)
}
  0x2b   :  { %s957_s25 = scalar_lea.vmem %s55_s15, 4096  ;;  %p962_p6 = scmp.lt.s32.totalorder %s55_s15, %s55_s15 }
  0x2c   :  { %p958_p5 = scmp.ne.s32.totalorder %s55_s15, %s957_s25  ;;  %p963_p7 = scmp.lt.s32.totalorder %s957_s25, %s957_s25 }
  0x2e   :  { %p964_p8 = por %p963_p7, %p962_p6 }
  0x30   :  { %p965_p9 = pnand %p964_p8, %p958_p5 }
  0x32   :  { %968 = shalt.err (!%p965_p9)
}
  0x33   :  { %s1048_s3 = smov 256   ;;  %s1049_s12 = smov 16  }
  0x34   :  { %60 = dma.hbm_to_vmem [thread:$0]  %s1205_s5, 4096, %s55_s15, [#allocation8], %s1048_s3, %s1048_s3, %s1049_s12  }
  0x35   :  { %1035 = dma.done.wait [#allocation5], 8192  }
  0x36   :  { %1036 = vsyncadd [#allocation5], 4294959104 }
  0x37   :  { %1037 = dma.done.wait [#allocation8], 12288  }
  0x38   :  { %1038 = vsyncadd [#allocation8], 4294955008  ;;  %v1050_v0 = vmov 0.0   ;;  %v148_v1 = vld [vmem:[#allocation7 + $0x8] sm:$0xff]  ;;  %v150_v3 = vld [vmem:[#allocation7 + $0x18] sm:$0xff] }
  0x39   :  { %275 = vmatprep.mubr.f32.mxu0 %v1050_v0  ;;  %346 = vmatprep.mubr.f32.mxu1 %v1050_v0  ;;  %v152_v2 = vld [vmem:[#allocation7 + $0x28] sm:$0xff]  ;;  %v154_v5 = vld [vmem:[#allocation7 + $0x38] sm:$0xff]  ;;  %v147_v6 = vld [vmem:[#allocation7] sm:$0xff] }
  0x3a   :  { %v706_v4 = vpack.c.bf16 %v152_v2, %v148_v1  ;;  %v151_v7 = vld [vmem:[#allocation7 + $0x20] sm:$0xff]  ;;  %v738_v8 = vpack.c.bf16 %v154_v5, %v150_v3  ;;  %v149_v10 = vld [vmem:[#allocation7 + $0x10] sm:$0xff]  ;;  %v156_v12 = vld [vmem:[#allocation7 + $0x48] sm:$0xff] }
  0x3b   :  { %v708_v9 = vpack.c.bf16 %v151_v7, %v147_v6  ;;  %v153_v11 = vld [vmem:[#allocation7 + $0x30] sm:$0xff]  ;;  %v160_v14 = vld [vmem:[#allocation7 + $0x68] sm:$0xff]  ;;  %v158_v15 = vld [vmem:[#allocation7 + $0x58] sm:$0xff] }
  0x3c   :  { %707 = vmatprep.subr.bf16.mxu0 %v706_v4  ;;  %v740_v13 = vpack.c.bf16 %v153_v11, %v149_v10  ;;  %v162_v16 = vld [vmem:[#allocation7 + $0x78] sm:$0xff]  ;;  %739 = vmatprep.subr.bf16.mxu1 %v738_v8  ;;  %v710_v17 = vpack.c.bf16 %v160_v14, %v156_v12  ;;  %v155_v19 = vld [vmem:[#allocation7 + $0x40] sm:$0xff]  ;;  %v157_v21 = vld [vmem:[#allocation7 + $0x50] sm:$0xff] }
  0x3d   :  { %709 = vmatpush1.bf16.msra.mxu0 %v708_v9  ;;  %v742_v18 = vpack.c.bf16 %v162_v16, %v158_v15  ;;  %v159_v20 = vld [vmem:[#allocation7 + $0x60] sm:$0xff]  ;;  %v161_v23 = vld [vmem:[#allocation7 + $0x70] sm:$0xff]  ;;  %v164_v24 = vld [vmem:[#allocation7 + $0x88] sm:$0xff] }
  0x3e   :  { %741 = vmatpush1.bf16.msra.mxu1 %v740_v13  ;;  %v712_v22 = vpack.c.bf16 %v159_v20, %v155_v19  ;;  %v168_v25 = vld [vmem:[#allocation7 + $0xa8] sm:$0xff]  ;;  %711 = vmatprep.subr.bf16.mxu0 %v710_v17  ;;  %v744_v26 = vpack.c.bf16 %v161_v23, %v157_v21  ;;  %v166_v28 = vld [vmem:[#allocation7 + $0x98] sm:$0xff]  ;;  %v163_v30 = vld [vmem:[#allocation7 + $0x80] sm:$0xff] }
  0x3f   :  { %743 = vmatprep.subr.bf16.mxu1 %v742_v18  ;;  %v714_v27 = vpack.c.bf16 %v168_v25, %v164_v24  ;;  %v170_v29 = vld [vmem:[#allocation7 + $0xb8] sm:$0xff]  ;;  %v167_v32 = vld [vmem:[#allocation7 + $0xa0] sm:$0xff]  ;;  %v165_v33 = vld [vmem:[#allocation7 + $0x90] sm:$0xff] }
  0x40   :  { %v746_v31 = vpack.c.bf16 %v170_v29, %v166_v28  ;;  %v169_v34 = vld [vmem:[#allocation7 + $0xb0] sm:$0xff]  ;;  %v716_v35 = vpack.c.bf16 %v167_v32, %v163_v30  ;;  %v172_v36 = vld [vmem:[#allocation7 + $0xc8] sm:$0xff]  ;;  %v174_v38 = vld [vmem:[#allocation7 + $0xd8] sm:$0xff] }
  0x41   :  { %713 = vmatpush1.bf16.msra.mxu0 %v712_v22  ;;  %v176_v37 = vld [vmem:[#allocation7 + $0xe8] sm:$0xff]  ;;  %v748_v39 = vpack.c.bf16 %v169_v34, %v165_v33  ;;  %v178_v41 = vld [vmem:[#allocation7 + $0xf8] sm:$0xff]  ;;  %v171_v42 = vld [vmem:[#allocation7 + $0xc0] sm:$0xff] }
  0x42   :  { %745 = vmatpush1.bf16.msra.mxu1 %v744_v26  ;;  %715 = vmatprep.subr.bf16.mxu0 %v714_v27  ;;  %v718_v40 = vpack.c.bf16 %v176_v37, %v172_v36  ;;  %v175_v43 = vld [vmem:[#allocation7 + $0xe0] sm:$0xff]  ;;  %v750_v44 = vpack.c.bf16 %v178_v41, %v174_v38  ;;  %v173_v45 = vld [vmem:[#allocation7 + $0xd0] sm:$0xff]  ;;  %v180_v47 = vld [vmem:[#allocation7 + $0x108] sm:$0xff] }
  0x43   :  { %747 = vmatprep.subr.bf16.mxu1 %v746_v31  ;;  %v177_v46 = vld [vmem:[#allocation7 + $0xf0] sm:$0xff]  ;;  %v184_v48 = vld [vmem:[#allocation7 + $0x128] sm:$0xff]  ;;  %v182_v49 = vld [vmem:[#allocation7 + $0x118] sm:$0xff]  ;;  %v720_v51 = vpack.c.bf16 %v175_v43, %v171_v42 }
  0x44   :  { %v186_v50 = vld [vmem:[#allocation7 + $0x138] sm:$0xff]  ;;  %v752_v52 = vpack.c.bf16 %v177_v46, %v173_v45  ;;  %v722_v53 = vpack.c.bf16 %v184_v48, %v180_v47  ;;  %v179_v54 = vld [vmem:[#allocation7 + $0x100] sm:$0xff]  ;;  %v181_v56 = vld [vmem:[#allocation7 + $0x110] sm:$0xff] }
  0x45   :  { %717 = vmatpush1.bf16.msra.mxu0 %v716_v35  ;;  %v183_v55 = vld [vmem:[#allocation7 + $0x120] sm:$0xff]  ;;  %v754_v57 = vpack.c.bf16 %v186_v50, %v182_v49  ;;  %v185_v58 = vld [vmem:[#allocation7 + $0x130] sm:$0xff]  ;;  %v188_v59 = vld [vmem:[#allocation7 + $0x148] sm:$0xff] }
  0x46   :  { %749 = vmatpush1.bf16.msra.mxu1 %v748_v39  ;;  %719 = vmatprep.subr.bf16.mxu0 %v718_v40  ;;  %v192_v60 = vld [vmem:[#allocation7 + $0x168] sm:$0xff]  ;;  %v190_v61 = vld [vmem:[#allocation7 + $0x158] sm:$0xff]  ;;  %v724_v63 = vpack.c.bf16 %v183_v55, %v179_v54  ;;  %v756_v1 = vpack.c.bf16 %v185_v58, %v181_v56  ;;  %v187_v3 = vld [vmem:[#allocation7 + $0x140] sm:$0xff] }
  0x47   :  { %751 = vmatprep.subr.bf16.mxu1 %v750_v44  ;;  %v194_v62 = vld [vmem:[#allocation7 + $0x178] sm:$0xff]  ;;  %v726_v2 = vpack.c.bf16 %v192_v60, %v188_v59  ;;  %v191_v4 = vld [vmem:[#allocation7 + $0x160] sm:$0xff]  ;;  %v189_v5 = vld [vmem:[#allocation7 + $0x150] sm:$0xff] }
  0x48   :  { %v758_v6 = vpack.c.bf16 %v194_v62, %v190_v61  ;;  %v193_v7 = vld [vmem:[#allocation7 + $0x170] sm:$0xff]  ;;  %v196_v8 = vld [vmem:[#allocation7 + $0x188] sm:$0xff]  ;;  %v198_v10 = vld [vmem:[#allocation7 + $0x198] sm:$0xff]  ;;  %v728_v12 = vpack.c.bf16 %v191_v4, %v187_v3 }
  0x49   :  { %721 = vmatpush1.bf16.msra.mxu0 %v720_v51  ;;  %v200_v9 = vld [vmem:[#allocation7 + $0x1a8] sm:$0xff]  ;;  %v202_v11 = vld [vmem:[#allocation7 + $0x1b8] sm:$0xff]  ;;  %v760_v13 = vpack.c.bf16 %v193_v7, %v189_v5  ;;  %v195_v15 = vld [vmem:[#allocation7 + $0x180] sm:$0xff] }
  0x4a   :  { %753 = vmatpush1.bf16.msra.mxu1 %v752_v52  ;;  %723 = vmatprep.subr.bf16.mxu0 %v722_v53  ;;  %v730_v14 = vpack.c.bf16 %v200_v9, %v196_v8  ;;  %v199_v16 = vld [vmem:[#allocation7 + $0x1a0] sm:$0xff]  ;;  %v197_v17 = vld [vmem:[#allocation7 + $0x190] sm:$0xff]  ;;  %v762_v18 = vpack.c.bf16 %v202_v11, %v198_v10  ;;  %v204_v20 = vld [vmem:[#allocation7 + $0x1c8] sm:$0xff] }
  0x4b   :  { %755 = vmatprep.subr.bf16.mxu1 %v754_v57  ;;  %v201_v19 = vld [vmem:[#allocation7 + $0x1b0] sm:$0xff]  ;;  %v208_v21 = vld [vmem:[#allocation7 + $0x1e8] sm:$0xff]  ;;  %v206_v22 = vld [vmem:[#allocation7 + $0x1d8] sm:$0xff]  ;;  %v732_v24 = vpack.c.bf16 %v199_v16, %v195_v15 }
  0x4c   :  { %v210_v23 = vld [vmem:[#allocation7 + $0x1f8] sm:$0xff]  ;;  %v764_v25 = vpack.c.bf16 %v201_v19, %v197_v17  ;;  %v734_v26 = vpack.c.bf16 %v208_v21, %v204_v20  ;;  %v203_v27 = vld [vmem:[#allocation7 + $0x1c0] sm:$0xff]  ;;  %v205_v29 = vld [vmem:[#allocation7 + $0x1d0] sm:$0xff] }
  0x4d   :  { %725 = vmatpush1.bf16.msra.mxu0 %v724_v63  ;;  %v207_v28 = vld [vmem:[#allocation7 + $0x1e0] sm:$0xff]  ;;  %v766_v30 = vpack.c.bf16 %v210_v23, %v206_v22  ;;  %v209_v31 = vld [vmem:[#allocation7 + $0x1f0] sm:$0xff]  ;;  %v84_v32 = vld [vmem:[#allocation4 + $0x8] sm:$0xff] }
  0x4e   :  { %757 = vmatpush1.bf16.msra.mxu1 %v756_v1  ;;  %727 = vmatprep.subr.bf16.mxu0 %v726_v2  ;;  %v88_v33 = vld [vmem:[#allocation4 + $0x28] sm:$0xff]  ;;  %v86_v34 = vld [vmem:[#allocation4 + $0x18] sm:$0xff]  ;;  %v736_v36 = vpack.c.bf16 %v207_v28, %v203_v27  ;;  %v768_v37 = vpack.c.bf16 %v209_v31, %v205_v29  ;;  %v83_v39 = vld [vmem:[#allocation4] sm:$0xff] }
  0x4f   :  { %759 = vmatprep.subr.bf16.mxu1 %v758_v6  ;;  %v90_v35 = vld [vmem:[#allocation4 + $0x38] sm:$0xff]  ;;  %v770_v38 = vpack.c.bf16 %v88_v33, %v84_v32  ;;  %v87_v40 = vld [vmem:[#allocation4 + $0x20] sm:$0xff]  ;;  %v85_v41 = vld [vmem:[#allocation4 + $0x10] sm:$0xff] }
  0x50   :  { %v802_v42 = vpack.c.bf16 %v90_v35, %v86_v34  ;;  %v89_v43 = vld [vmem:[#allocation4 + $0x30] sm:$0xff]  ;;  %v92_v44 = vld [vmem:[#allocation4 + $0x48] sm:$0xff]  ;;  %v94_v46 = vld [vmem:[#allocation4 + $0x58] sm:$0xff]  ;;  %v772_v49 = vpack.c.bf16 %v87_v40, %v83_v39 }
  0x51   :  { %729 = vmatpush1.bf16.msra.mxu0 %v728_v12  ;;  %v96_v45 = vld [vmem:[#allocation4 + $0x68] sm:$0xff]  ;;  %v98_v47 = vld [vmem:[#allocation4 + $0x78] sm:$0xff]  ;;  %v76_v48 = vld [vmem:[%s1201_s1] sm:$0xff]  ;;  %v804_v50 = vpack.c.bf16 %v89_v43, %v85_v41 }
  0x52   :  { %761 = vmatpush1.bf16.msra.mxu1 %v760_v13  ;;  %731 = vmatprep.subr.bf16.mxu0 %v730_v14  ;;  %v774_v51 = vpack.c.bf16 %v96_v45, %v92_v44  ;;  %v91_v52 = vld [vmem:[#allocation4 + $0x40] sm:$0xff]  ;;  %v93_v54 = vld [vmem:[#allocation4 + $0x50] sm:$0xff]  ;;  %v806_v55 = vpack.c.bf16 %v98_v47, %v94_v46  ;;  %v100_v57 = vld [vmem:[#allocation4 + $0x88] sm:$0xff] }
  0x53   :  { %763 = vmatprep.subr.bf16.mxu1 %v762_v18  ;;  %v95_v53 = vld [vmem:[#allocation4 + $0x60] sm:$0xff]  ;;  %v97_v56 = vld [vmem:[#allocation4 + $0x70] sm:$0xff]  ;;  %v104_v58 = vld [vmem:[#allocation4 + $0xa8] sm:$0xff] }
  0x54   :  { %v102_v59 = vld [vmem:[#allocation4 + $0x98] sm:$0xff]  ;;  %v776_v61 = vpack.c.bf16 %v95_v53, %v91_v52  ;;  %v808_v62 = vpack.c.bf16 %v97_v56, %v93_v54  ;;  %v778_v63 = vpack.c.bf16 %v104_v58, %v100_v57  ;;  %v99_v1 = vld [vmem:[#allocation4 + $0x80] sm:$0xff]  ;;  %v101_v3 = vld [vmem:[#allocation4 + $0x90] sm:$0xff] }
  0x55   :  { %733 = vmatpush1.bf16.msra.mxu0 %v732_v24  ;;  %v106_v60 = vld [vmem:[#allocation4 + $0xb8] sm:$0xff]  ;;  %v103_v2 = vld [vmem:[#allocation4 + $0xa0] sm:$0xff]  ;;  %v105_v5 = vld [vmem:[#allocation4 + $0xb0] sm:$0xff] }
  0x56   :  { %765 = vmatpush1.bf16.msra.mxu1 %v764_v25  ;;  %735 = vmatprep.subr.bf16.mxu0 %v734_v26  ;;  %v810_v4 = vpack.c.bf16 %v106_v60, %v102_v59  ;;  %v108_v6 = vld [vmem:[#allocation4 + $0xc8] sm:$0xff]  ;;  %v110_v8 = vld [vmem:[#allocation4 + $0xd8] sm:$0xff]  ;;  %v780_v10 = vpack.c.bf16 %v103_v2, %v99_v1  ;;  %v812_v11 = vpack.c.bf16 %v105_v5, %v101_v3  ;;  %v107_v13 = vld [vmem:[#allocation4 + $0xc0] sm:$0xff] }
  0x57   :  { %767 = vmatprep.subr.bf16.mxu1 %v766_v30  ;;  %v112_v7 = vld [vmem:[#allocation4 + $0xe8] sm:$0xff]  ;;  %v114_v9 = vld [vmem:[#allocation4 + $0xf8] sm:$0xff]  ;;  %v111_v14 = vld [vmem:[#allocation4 + $0xe0] sm:$0xff] }
  0x58   :  { %v782_v12 = vpack.c.bf16 %v112_v7, %v108_v6  ;;  %v109_v15 = vld [vmem:[#allocation4 + $0xd0] sm:$0xff]  ;;  %v814_v16 = vpack.c.bf16 %v114_v9, %v110_v8  ;;  %v116_v18 = vld [vmem:[#allocation4 + $0x108] sm:$0xff]  ;;  %v118_v20 = vld [vmem:[#allocation4 + $0x118] sm:$0xff]  ;;  %v784_v22 = vpack.c.bf16 %v111_v14, %v107_v13 }
  0x59   :  { %737 = vmatpush1.bf16.msra.mxu0 %v736_v36  ;;  %v113_v17 = vld [vmem:[#allocation4 + $0xf0] sm:$0xff]  ;;  %v120_v19 = vld [vmem:[#allocation4 + $0x128] sm:$0xff]  ;;  %v122_v21 = vld [vmem:[#allocation4 + $0x138] sm:$0xff] }
  0x5a   :  { %769 = vmatpush1.bf16.msra.mxu1 %v768_v37  ;;  %771 = vmatprep.subr.bf16.mxu0 %v770_v38  ;;  %v816_v23 = vpack.c.bf16 %v113_v17, %v109_v15  ;;  %v786_v24 = vpack.c.bf16 %v120_v19, %v116_v18  ;;  %v115_v25 = vld [vmem:[#allocation4 + $0x100] sm:$0xff]  ;;  %v117_v27 = vld [vmem:[#allocation4 + $0x110] sm:$0xff]  ;;  %v818_v28 = vpack.c.bf16 %v122_v21, %v118_v20  ;;  %v124_v30 = vld [vmem:[#allocation4 + $0x148] sm:$0xff] }
  0x5b   :  { %803 = vmatprep.subr.bf16.mxu1 %v802_v42  ;;  %v119_v26 = vld [vmem:[#allocation4 + $0x120] sm:$0xff]  ;;  %v121_v29 = vld [vmem:[#allocation4 + $0x130] sm:$0xff]  ;;  %v128_v31 = vld [vmem:[#allocation4 + $0x168] sm:$0xff] }
  0x5c   :  { %276 = vmatmul.mubr.f32.vlgmr.msra.gmra.mrb[0].mxu0 %v76_v48  ;;  %v126_v32 = vld [vmem:[#allocation4 + $0x158] sm:$0xff]  ;;  %v788_v34 = vpack.c.bf16 %v119_v26, %v115_v25  ;;  %v820_v35 = vpack.c.bf16 %v121_v29, %v117_v27  ;;  %v790_v36 = vpack.c.bf16 %v128_v31, %v124_v30  ;;  %v123_v37 = vld [vmem:[#allocation4 + $0x140] sm:$0xff]  ;;  %v125_v39 = vld [vmem:[#allocation4 + $0x150] sm:$0xff] }
  0x5d   :  { %347 = vmatmul.mubr.f32.vlgmr.msra.gmra.mrb[0].mxu1 %v76_v48  ;;  %773 = vmatpush1.bf16.msra.mxu0 %v772_v49  ;;  %v130_v33 = vld [vmem:[#allocation4 + $0x178] sm:$0xff]  ;;  %v127_v38 = vld [vmem:[#allocation4 + $0x160] sm:$0xff]  ;;  %v129_v41 = vld [vmem:[#allocation4 + $0x170] sm:$0xff] }
  0x5e   :  { %805 = vmatpush1.bf16.msra.mxu1 %v804_v50  ;;  %775 = vmatprep.subr.bf16.mxu0 %v774_v51  ;;  %v822_v40 = vpack.c.bf16 %v130_v33, %v126_v32  ;;  %v132_v42 = vld [vmem:[#allocation4 + $0x188] sm:$0xff]  ;;  %v134_v44 = vld [vmem:[#allocation4 + $0x198] sm:$0xff]  ;;  %v792_v46 = vpack.c.bf16 %v127_v38, %v123_v37  ;;  %v824_v47 = vpack.c.bf16 %v129_v41, %v125_v39  ;;  %v131_v49 = vld [vmem:[#allocation4 + $0x180] sm:$0xff] }
  0x5f   :  { %807 = vmatprep.subr.bf16.mxu1 %v806_v55  ;;  %417 = vmatprep.mubr.f32.mxu0 %v1050_v0  ;;  %v136_v43 = vld [vmem:[#allocation4 + $0x1a8] sm:$0xff]  ;;  %v138_v45 = vld [vmem:[#allocation4 + $0x1b8] sm:$0xff]  ;;  %v135_v50 = vld [vmem:[#allocation4 + $0x1a0] sm:$0xff] }
  0x60   :  { %488 = vmatprep.mubr.f32.mxu1 %v1050_v0  ;;  %v794_v48 = vpack.c.bf16 %v136_v43, %v132_v42  ;;  %v133_v51 = vld [vmem:[#allocation4 + $0x190] sm:$0xff]  ;;  %v826_v52 = vpack.c.bf16 %v138_v45, %v134_v44  ;;  %v140_v54 = vld [vmem:[#allocation4 + $0x1c8] sm:$0xff]  ;;  %v142_v56 = vld [vmem:[#allocation4 + $0x1d8] sm:$0xff]  ;;  %v796_v58 = vpack.c.bf16 %v135_v50, %v131_v49 }
  0x61   :  { %777 = vmatpush1.bf16.msra.mxu0 %v776_v61  ;;  %v137_v53 = vld [vmem:[#allocation4 + $0x1b0] sm:$0xff]  ;;  %v144_v55 = vld [vmem:[#allocation4 + $0x1e8] sm:$0xff]  ;;  %v146_v57 = vld [vmem:[#allocation4 + $0x1f8] sm:$0xff] }
  0x62   :  { %809 = vmatpush1.bf16.msra.mxu1 %v808_v62  ;;  %779 = vmatprep.subr.bf16.mxu0 %v778_v63  ;;  %v828_v59 = vpack.c.bf16 %v137_v53, %v133_v51  ;;  %v798_v60 = vpack.c.bf16 %v144_v55, %v140_v54  ;;  %v139_v61 = vld [vmem:[#allocation4 + $0x1c0] sm:$0xff]  ;;  %v830_v63 = vpack.c.bf16 %v146_v57, %v142_v56  ;;  %v141_v1 = vld [vmem:[#allocation4 + $0x1d0] sm:$0xff]  ;;  %v520_v6 = vld [vmem:[#allocation9 + $0x8] sm:$0xff] }
  0x63   :  { %811 = vmatprep.subr.bf16.mxu1 %v810_v4  ;;  %v143_v62 = vld [vmem:[#allocation4 + $0x1e0] sm:$0xff]  ;;  %v145_v2 = vld [vmem:[#allocation4 + $0x1f0] sm:$0xff]  ;;  %v522_v7 = vld [vmem:[#allocation9 + $0x18] sm:$0xff] }
  0x64   :  { %v800_v3 = vpack.c.bf16 %v143_v62, %v139_v61  ;;  %v832_v4 = vpack.c.bf16 %v145_v2, %v141_v1  ;;  %v82_v5 = vld [vmem:[%s1200_s0] sm:$0xff]  ;;  %v834_v8 = vpack.c.bf16 %v522_v7, %v520_v6  ;;  %v526_v13 = vld [vmem:[#allocation9 + $0x38] sm:$0xff]  ;;  %v528_v18 = vld [vmem:[#allocation9 + $0x48] sm:$0xff] }
  0x65   :  { %781 = vmatpush1.bf16.msra.mxu0 %v780_v10  ;;  %v519_v9 = vld [vmem:[#allocation9] sm:$0xff]  ;;  %v521_v10 = vld [vmem:[#allocation9 + $0x10] sm:$0xff]  ;;  %v530_v19 = vld [vmem:[#allocation9 + $0x58] sm:$0xff] }
  0x66   :  { %813 = vmatpush1.bf16.msra.mxu1 %v812_v11  ;;  %783 = vmatprep.subr.bf16.mxu0 %v782_v12  ;;  %v836_v11 = vpack.c.bf16 %v521_v10, %v519_v9  ;;  %v524_v12 = vld [vmem:[#allocation9 + $0x28] sm:$0xff]  ;;  %v523_v15 = vld [vmem:[#allocation9 + $0x20] sm:$0xff]  ;;  %v842_v20 = vpack.c.bf16 %v530_v19, %v528_v18  ;;  %v529_v21 = vld [vmem:[#allocation9 + $0x50] sm:$0xff] }
  0x67   :  { %815 = vmatprep.subr.bf16.mxu1 %v814_v16  ;;  %v838_v14 = vpack.c.bf16 %v526_v13, %v524_v12  ;;  %v525_v16 = vld [vmem:[#allocation9 + $0x30] sm:$0xff]  ;;  %v531_v26 = vld [vmem:[#allocation9 + $0x60] sm:$0xff]  ;;  %v536_v29 = vld [vmem:[#allocation9 + $0x88] sm:$0xff]  ;;  %v553_v13 = vlaneseq }
  0x68   :  { %v840_v17 = vpack.c.bf16 %v525_v16, %v523_v15  ;;  %v533_v27 = vld [vmem:[#allocation9 + $0x70] sm:$0xff]  ;;  %v538_v30 = vld [vmem:[#allocation9 + $0x98] sm:$0xff]  ;;  %v535_v32 = vld [vmem:[#allocation9 + $0x80] sm:$0xff] }
  0x69   :  { %785 = vmatpush1.bf16.msra.mxu0 %v784_v22  ;;  %v850_v31 = vpack.c.bf16 %v538_v30, %v536_v29  ;;  %v537_v33 = vld [vmem:[#allocation9 + $0x90] sm:$0xff]  ;;  %v539_v38 = vld [vmem:[#allocation9 + $0xa0] sm:$0xff]  ;;  %v546_v42 = vld [vmem:[#allocation9 + $0xd8] sm:$0xff] }
  0x6a   :  { %817 = vmatpush1.bf16.msra.mxu1 %v816_v23  ;;  %787 = vmatprep.subr.bf16.mxu0 %v786_v24  ;;  %v532_v23 = vld [vmem:[#allocation9 + $0x68] sm:$0xff]  ;;  %v534_v24 = vld [vmem:[#allocation9 + $0x78] sm:$0xff]  ;;  %v541_v39 = vld [vmem:[#allocation9 + $0xb0] sm:$0xff] }
  0x6b   :  { %819 = vmatprep.subr.bf16.mxu1 %v818_v28  ;;  %v846_v25 = vpack.c.bf16 %v534_v24, %v532_v23  ;;  %v848_v28 = vpack.c.bf16 %v533_v27, %v531_v26  ;;  %v856_v41 = vpack.c.bf16 %v541_v39, %v539_v38  ;;  %v543_v43 = vld [vmem:[#allocation9 + $0xc0] sm:$0xff]  ;;  %v545_v44 = vld [vmem:[#allocation9 + $0xd0] sm:$0xff] }
  0x6c   :  { %v547_v50 = vld [vmem:[#allocation9 + $0xe0] sm:$0xff]  ;;  %v549_v51 = vld [vmem:[#allocation9 + $0xf0] sm:$0xff] }
  0x6d   :  { %789 = vmatpush1.bf16.msra.mxu0 %v788_v34  ;;  %v852_v34 = vpack.c.bf16 %v537_v33, %v535_v32  ;;  %v551_v16 = vld [vmem:[%s1206_s6] sm:$0x3] }
  0x6e   :  { %821 = vmatpush1.bf16.msra.mxu1 %v820_v35  ;;  %791 = vmatprep.subr.bf16.mxu0 %v790_v36  ;;  %v540_v35 = vld [vmem:[#allocation9 + $0xa8] sm:$0xff]  ;;  %v542_v36 = vld [vmem:[#allocation9 + $0xb8] sm:$0xff] }
  0x6f   :  { %823 = vmatprep.subr.bf16.mxu1 %v822_v40  ;;  %v854_v37 = vpack.c.bf16 %v542_v36, %v540_v35  ;;  %v544_v40 = vld [vmem:[#allocation9 + $0xc8] sm:$0xff] }
  0x70   :  { %v858_v45 = vpack.c.bf16 %v546_v42, %v544_v40 }
  0x71   :  { %793 = vmatpush1.bf16.msra.mxu0 %v792_v46  ;;  %v548_v46 = vld [vmem:[#allocation9 + $0xe8] sm:$0xff] }
  0x72   :  { %825 = vmatpush1.bf16.msra.mxu1 %v824_v47  ;;  %795 = vmatprep.subr.bf16.mxu0 %v794_v48  ;;  %v550_v47 = vld [vmem:[#allocation9 + $0xf8] sm:$0xff]  ;;  %v860_v48 = vpack.c.bf16 %v545_v44, %v543_v43 }
  0x73   :  { %827 = vmatprep.subr.bf16.mxu1 %v826_v52  ;;  %v862_v49 = vpack.c.bf16 %v550_v47, %v548_v46  ;;  %v864_v52 = vpack.c.bf16 %v549_v51, %v547_v50 }
  0x75   :  { %797 = vmatpush1.bf16.msra.mxu0 %v796_v58 }
  0x76   :  { %829 = vmatpush1.bf16.msra.mxu1 %v828_v59  ;;  %799 = vmatprep.subr.bf16.mxu0 %v798_v60 }
  0x77   :  { %831 = vmatprep.subr.bf16.mxu1 %v830_v63 }
  0x79   :  { %801 = vmatpush1.bf16.msra.mxu0 %v800_v3  ;;  %v78_v3 = vld [vmem:[%s1202_s2] sm:$0xff]  ;;  %s1051_s2 = smov [#allocation11]  }
  0x7a   :  { %833 = vmatpush1.bf16.msra.mxu1 %v832_v4  ;;  %835 = vmatprep.subr.bf16.mxu0 %v834_v8  ;;  %s676_s6 = sshll.u32 %s1051_s2, 4  ;;  %s677_s6 = int_to_ptr.vmem [resolvable:$true] %s676_s6 }
  0x7b   :  { %s969_s11 = scalar_lea.vmem %s677_s6, 128  ;;  %p974_p11 = scmp.lt.s32.totalorder %s677_s6, %s677_s6 }
  0x7c   :  { %418 = vmatmul.mubr.f32.vlgmr.msra.gmra.mrb[0].mxu0 %v82_v5  ;;  %p970_p10 = scmp.ne.s32.totalorder %s677_s6, %s969_s11  ;;  %p975_p12 = scmp.lt.s32.totalorder %s969_s11, %s969_s11 }
  0x7d   :  { %489 = vmatmul.mubr.f32.vlgmr.msra.gmra.mrb[0].mxu1 %v82_v5  ;;  %627 = vmatprep.mubr.f32.mxu0 %v1050_v0  ;;  %v527_v0 = vld [vmem:[#allocation9 + $0x40] sm:$0xff] }
  0x7e   :  { %837 = vmatpush1.bf16.msra.mxu0 %v836_v11  ;;  %v844_v22 = vpack.c.bf16 %v529_v21, %v527_v0  ;;  %p976_p13 = por %p975_p12, %p974_p11 }
  0x7f   :  { %839 = vmatprep.subr.bf16.mxu0 %v838_v14  ;;  %v554_v14 = vshrl.u32 %v553_v13, 7 }
  0x80   :  { %p977_p0 = pnand %p976_p13, %p970_p10 }
  0x81   :  { %v555_v15 = vsub.s32 0, %v554_v14 }
  0x82   :  { %841 = vmatpush1.bf16.msra.mxu0 %v840_v17  ;;  %v559_v17 = vsub.s32 1, %v554_v14 }
  0x83   :  { %843 = vmatprep.subr.bf16.mxu0 %v842_v20  ;;  %v556_v18 = vrot.slane %v551_v16, %v555_v15 }
  0x84   :  { %v560_v19 = vrot.slane %v551_v16, %v559_v17 }
  0x86   :  { %845 = vmatpush1.bf16.msra.mxu0 %v844_v22 }
  0x87   :  { %847 = vmatprep.subr.bf16.mxu0 %v846_v25 }
  0x8a   :  { %849 = vmatpush1.bf16.msra.mxu0 %v848_v28 }
  0x8b   :  { %851 = vmatprep.subr.bf16.mxu0 %v850_v31 }
  0x8e   :  { %853 = vmatpush1.bf16.msra.mxu0 %v852_v34 }
  0x8f   :  { %855 = vmatprep.subr.bf16.mxu0 %v854_v37 }
  0x92   :  { %857 = vmatpush1.bf16.msra.mxu0 %v856_v41 }
  0x93   :  { %859 = vmatprep.subr.bf16.mxu0 %v858_v45 }
  0x96   :  { %861 = vmatpush1.bf16.msra.mxu0 %v860_v48 }
  0x97   :  { %863 = vmatprep.subr.bf16.mxu0 %v862_v49 }
  0x9a   :  { %865 = vmatpush1.bf16.msra.mxu0 %v864_v52 }
 0x14f   :  { %v419_v53 = vpop.f32.mrb[0].mxu0 }
 0x150   :  { %v703_v54 = vmul.f32 -1.442695, %v419_v53  ;;  %v490_v55 = vpop.f32.mrb[0].mxu1  ;;  %v421_v56 = vpop.f32.mrb[1].mxu0 }
 0x151   :  { %v704_v57 = vmul.f32 -1.442695, %v421_v56  ;;  %v492_v58 = vpop.f32.mrb[1].mxu1 }
 0x152   :  { %881 = vpow2.f32 %v703_v54  ;;  %v705_v59 = vmul.f32 -1.442695, %v492_v58 }
 0x153   :  { %883 = vpow2.f32 %v704_v57 }
 0x154   :  { %885 = vpow2.f32 %v705_v59 }
 0x155   :  { %887 = vtanh.f32 %v490_v55 }
 0x15c   :  { %v882_v60 = vpop.eup %881 }
 0x15d   :  { %v884_v61 = vpop.eup %883  ;;  %v501_v62 = vadd.f32 1.0, %v882_v60 }
 0x15e   :  { %v502_v63 = vadd.f32 1.0, %v884_v61  ;;  %v886_v1 = vpop.eup %885 }
 0x15f   :  { %889 = vrcp.f32 %v501_v62  ;;  %v888_v2 = vpop.eup %887  ;;  %v511_v7 = vadd.f32 1.0, %v886_v1 }
 0x160   :  { %891 = vrcp.f32 %v502_v63 }
 0x161   :  { %893 = vrcp.f32 %v511_v7 }
 0x169   :  { %v890_v4 = vpop.eup %889 }
 0x16a   :  { %v892_v5 = vpop.eup %891  ;;  %v515_v6 = vmul.f32 %v890_v4, %v888_v2 }
 0x16b   :  { %v514_v8 = vmul.f32 %v892_v5, %v78_v3  ;;  %v894_v10 = vpop.eup %893 }
 0x16d   :  { %v516_v9 = vadd.f32 %v515_v6, %v514_v8 }
 0x16f   :  { %659 = vst [vmem:[#allocation13] sm:$0xff] %v516_v9  ;;  %895 = vtanh.f32 %v516_v9 }
 0x179   :  { %v896_v11 = vpop.eup %895 }
 0x17a   :  { %v518_v12 = vmul.f32 %v896_v11, %v894_v10 }
 0x17c   :  { %628 = vmatmul.mubr.f32.vlgmr.msra.gmra.mrb[2].mxu0 %v518_v12  ;;  %658 = vst [vmem:[#allocation11] sm:$0xff] %v518_v12 }
 0x24f   :  { %v629_v20 = vpop.f32.mrb[2].mxu0 }
 0x250   :  { %v630_v0 = vadd.f32 %v629_v20, %v556_v18  ;;  %v631_v21 = vpop.f32.mrb[3].mxu0 }
 0x251   :  { %v632_v22 = vadd.f32 %v631_v21, %v560_v19 }
 0x253   :  { %v634_v23 = vmax.f32 %v630_v0, %v632_v22 }
 0x255   :  { %635 = vmax.xlane.f32.xlu0 %v634_v23 }
 0x2e2   :  { %v636_v24 = vpop.xlane.xlu0 %635 }
 0x2e3   :  { %v637_v25 = vsub.f32 %v630_v0, %v636_v24  ;;  %v638_v26 = vsub.f32 %v632_v22, %v636_v24 }
 0x2e5   :  { %v639_v27 = vmul.f32 1.442695, %v637_v25  ;;  %v641_v28 = vmul.f32 1.442695, %v638_v26 }
 0x2e7   :  { %897 = vpow2.f32 %v639_v27 }
 0x2e8   :  { %899 = vpow2.f32 %v641_v28 }
 0x2f1   :  { %v898_v29 = vpop.eup %897 }
 0x2f2   :  { %v900_v30 = vpop.eup %899 }
 0x2f3   :  { %v643_v31 = vadd.f32 %v900_v30, %v898_v29 }
 0x2f5   :  { %644 = vadd.xlane.f32.xlu0 %v643_v31 }
 0x2f6   :  { %980 = shalt.err (!%p977_p0)
}
 0x2f7   :  { %s981_s10 = scalar_lea.hbm %s1208_s8, 128 }
 0x2f8   :  { %p982_p1 = scmp.ne.s32.totalorder %s1208_s8, %s981_s10  ;;  %p985_p2 = scmp.lt.u32.totalorder %s981_s10, %s1208_s8 }
 0x2fa   :  { %p987_p3 = pnand %p985_p2, %p982_p1 }
 0x2fc   :  { %990 = shalt.err (!%p987_p3)
}
 0x2fd   :  { %679 = dma.vmem_to_hbm [thread:$0]  %s677_s6, 128, %s1208_s8, [#allocation12]  }
 0x2fe   :  { %s1052_s20 = smov [#allocation13]  }
 0x2ff   :  { %s686_s23 = sshll.u32 %s1052_s20, 4  ;;  %s687_s23 = int_to_ptr.vmem [resolvable:$true] %s686_s23 }
 0x300   :  { %s991_s24 = scalar_lea.vmem %s687_s23, 128  ;;  %p996_p5 = scmp.lt.s32.totalorder %s687_s23, %s687_s23 }
 0x301   :  { %p992_p4 = scmp.ne.s32.totalorder %s687_s23, %s991_s24  ;;  %p997_p6 = scmp.lt.s32.totalorder %s991_s24, %s991_s24 }
 0x303   :  { %p998_p7 = por %p997_p6, %p996_p5 }
 0x305   :  { %p999_p8 = pnand %p998_p7, %p992_p4 }
 0x307   :  { %1002 = shalt.err (!%p999_p8)
}
 0x308   :  { %s1003_s12 = scalar_lea.hbm %s1209_s9, 128 }
 0x309   :  { %p1004_p9 = scmp.ne.s32.totalorder %s1209_s9, %s1003_s12  ;;  %p1007_p10 = scmp.lt.u32.totalorder %s1003_s12, %s1209_s9 }
 0x30b   :  { %p1009_p11 = pnand %p1007_p10, %p1004_p9 }
 0x30d   :  { %1012 = shalt.err (!%p1009_p11)
}
 0x30e   :  { %689 = dma.vmem_to_hbm [thread:$0]  %s687_s23, 128, %s1209_s9, [#allocation12]  }
 0x30f   :  { %s1053_s27 = smov [#allocation10]  }
 0x310   :  { %s666_s0 = sshll.u32 %s1053_s27, 4  ;;  %s667_s0 = int_to_ptr.vmem [resolvable:$true] %s666_s0 }
 0x311   :  { %s1013_s28 = scalar_lea.vmem %s667_s0, 256  ;;  %p1018_p13 = scmp.lt.s32.totalorder %s667_s0, %s667_s0 }
 0x312   :  { %p1014_p12 = scmp.ne.s32.totalorder %s667_s0, %s1013_s28  ;;  %p1019_p0 = scmp.lt.s32.totalorder %s1013_s28, %s1013_s28 }
 0x314   :  { %p1020_p1 = por %p1019_p0, %p1018_p13 }
 0x316   :  { %p1021_p2 = pnand %p1020_p1, %p1014_p12 }
 0x382   :  { %v645_v32 = vpop.xlane.xlu0 %644 }
 0x383   :  { %901 = vlog2.f32 %v645_v32 }
 0x38d   :  { %v902_v33 = vpop.eup %901 }
 0x38e   :  { %v647_v34 = vmul.f32 0.6931472, %v902_v33 }
 0x390   :  { %v648_v35 = vadd.f32 %v647_v34, %v636_v24 }
 0x392   :  { %v649_v36 = vsub.f32 %v630_v0, %v648_v35  ;;  %v650_v37 = vsub.f32 %v632_v22, %v648_v35 }
 0x394   :  { %651 = vst [vmem:[#allocation10] sm:$0xff] %v649_v36  ;;  %652 = vst [vmem:[#allocation10 + $0x8] sm:$0xff] %v650_v37 }
 0x395   :  { %1024 = shalt.err (!%p1021_p2)
}
 0x396   :  { %s1025_s30 = scalar_lea.hbm %s1207_s7, 256 }
 0x397   :  { %p1026_p3 = scmp.ne.s32.totalorder %s1207_s7, %s1025_s30  ;;  %p1029_p4 = scmp.lt.u32.totalorder %s1025_s30, %s1207_s7 }
 0x399   :  { %p1031_p5 = pnand %p1029_p4, %p1026_p3 }
 0x39b   :  { %1034 = shalt.err (!%p1031_p5)
}
 0x39c   :  { %669 = dma.vmem_to_hbm [thread:$0]  %s667_s0, 256, %s1207_s7, [#allocation6]  }
 0x39d   :  { %1039 = dma.done.wait [#allocation6], 256  }
 0x39e   :  { %1040 = vsyncadd [#allocation6], 4294967040 }
 0x39f   :  { %1041 = dma.done.wait [#allocation12], 256  }
 0x3a0   :  { %1042 = vsyncadd [#allocation12], 4294967040 }
 0x3a1   :  { %699 = vsyncpa [#allocation5], 1 }
 0x3a2   :  { %700 = vsyncpa [#allocation8], 1 }
 0x3a3   :  { %701 = vsyncpa [#allocation6], 1 }
 0x3a4   :  { %702 = vsyncpa [#allocation12], 1 }

</bundles_post_ra>
